<compile_context>
chip_gen: v6e
topology: v6e:2x2x1
jax: 0.10.0
libtpu: 0.0.40
codegen_flags: <defaults>
</compile_context>

<pallas_src>
import jax
import jax.numpy as jnp
from jax.experimental import pallas as pl
from jax.experimental.pallas import tpu as pltpu


def actor_kernel(x_ref, wf_ref, w1t_ref, w2t_ref, w3_ref, mean_ref):
    """One batch tile; activations transposed (batch on the lane axis).

    x_ref   : [6, B_TILE]   rows 0:2 = s_h^T, rows 2:6 = s_ev^T
    wf_ref  : [H, 6]        block-diagonal fused feature weight (transposed)
    w1t_ref : [H, H]        w1^T
    w2t_ref : [H, H]        w2^T
    w3_ref  : [H, 1]        final projection column
    mean_ref: [1, B_TILE]   lane-dense output
    """
    half = wf_ref.shape[0] // 2

    # Both feature branches in a single MXU push + single tanh.
    # rows 0:half = feature_ev^T, rows half:H = feature_h^T
    feats = jnp.tanh(jnp.dot(wf_ref[...], x_ref[...],
                             preferred_element_type=jnp.float32))
    fev = feats[:half, :]        # 8-sublane-aligned static slices
    fh = feats[half:, :]

    # fused^T = concat([feature_ev, feature_h * feature_ev], -1)^T, built along
    # the sublane axis so w1 is one full matmul instead of two half-K matmuls.
    fused = jnp.concatenate([fev, fh * fev], axis=0)          # [H, B_TILE]

    h1 = jnp.tanh(jnp.dot(w1t_ref[...], fused,
                          preferred_element_type=jnp.float32))
    h2 = jnp.tanh(jnp.dot(w2t_ref[...], h1,
                          preferred_element_type=jnp.float32))

    # N=1 projection: VPU multiply + sublane reduce (skips a wasted MXU pass)
    # and writes straight into the lane-dense [1, B_TILE] output block.
    mean_ref[...] = jnp.tanh(jnp.sum(h2 * w3_ref[...], axis=0, keepdims=True))


def actor_forward(s_h, s_ev, params, *, b_tile=256):
    """params: w_h [2,H/2], w_ev [4,H/2], w1 [H,H], w2 [H,H], w3 [H,1]
    (all stored [in, out]), log_std [a_dim]."""
    B = s_h.shape[0]
    w_h, w_ev = params["w_h"], params["w_ev"]
    w1, w2, w3 = params["w1"], params["w2"], params["w3"]
    hidden = w1.shape[0]
    half = hidden // 2
    assert w_h.shape == (2, half) and w_ev.shape == (4, half)
    assert w1.shape == (hidden, hidden) and w2.shape == (hidden, hidden)
    assert w3.shape == (hidden, 1)

    # std is input-independent: compute in plain JAX, keep it out of the kernel.
    std = jnp.exp(params["log_std"])

    # ---- wrapper-side layout plumbing (cacheable once per train step) ----
    # Fused, transposed, block-diagonal feature weight:
    #   rows 0:half : w_ev^T in cols 2:6 -> feature_ev
    #   rows half:H : w_h^T  in cols 0:2 -> feature_h
    wf = jnp.concatenate([
        jnp.concatenate([jnp.zeros((half, 2), jnp.float32), w_ev.T], axis=1),
        jnp.concatenate([w_h.T, jnp.zeros((half, 4), jnp.float32)], axis=1),
    ], axis=0)
    w1t, w2t = w1.T, w2.T

    # Inputs transposed so batch sits on the lane axis; pad batch to tile size.
    x = jnp.concatenate([s_h, s_ev], axis=1)                  # [B, 6]
    n_tiles = pl.cdiv(B, b_tile)
    b_pad = n_tiles * b_tile
    x_t = jnp.pad(x, ((0, b_pad - B), (0, 0))).T              # [6, B_pad]

    mean_t = pl.pallas_call(
        actor_kernel,
        out_shape=jax.ShapeDtypeStruct((1, b_pad), jnp.float32),
        grid=(n_tiles,),
        in_specs=[
            pl.BlockSpec((6, b_tile), lambda i: (0, i)),       # activations: tiled
            pl.BlockSpec((hidden, 6), lambda i: (0, 0)),       # weights: resident
            pl.BlockSpec((hidden, hidden), lambda i: (0, 0)),
            pl.BlockSpec((hidden, hidden), lambda i: (0, 0)),
            pl.BlockSpec((hidden, 1), lambda i: (0, 0)),
        ],
        out_specs=pl.BlockSpec((1, b_tile), lambda i: (0, i)), # lane-dense store
        compiler_params=pltpu.CompilerParams(
            dimension_semantics=("parallel",)),                # megacore on v7x
    )(x_t, wf, w1t, w2t, w3)

    mean = mean_t[0, :B].reshape(B, 1)
    return mean, std


def init_params(key, hidden, a_dim):
    """Matches the PyTorch module: Linear weights ~ N(0, 0.01), no biases,
    log_std = ones([a_dim]). Stored in [in, out] layout."""
    half = hidden // 2
    ks = jax.random.split(key, 5)
    std = 0.01
    return {
        "w_h":  std * jax.random.normal(ks[0], (2, half), jnp.float32),
        "w_ev": std * jax.random.normal(ks[1], (4, half), jnp.float32),
        "w1":   std * jax.random.normal(ks[2], (hidden, hidden), jnp.float32),
        "w2":   std * jax.random.normal(ks[3], (hidden, hidden), jnp.float32),
        "w3":   std * jax.random.normal(ks[4], (hidden, 1), jnp.float32),
        "log_std": jnp.ones((a_dim,), jnp.float32),
    }


def actor_reference(s_h, s_ev, params):
    """Pure-JAX reference (mirrors the PyTorch forward)."""
    fh = jnp.tanh(s_h @ params["w_h"])
    fev = jnp.tanh(s_ev @ params["w_ev"])
    x = jnp.concatenate([fev, fh * fev], axis=-1)
    h1 = jnp.tanh(x @ params["w1"])
    h2 = jnp.tanh(h1 @ params["w2"])
    mean = jnp.tanh(h2 @ params["w3"])
    stdv = jnp.exp(params["log_std"])
    return mean, stdv


if __name__ == "__main__":
    B, hidden, a_dim = 8, 32, 1

    key = jax.random.PRNGKey(0)
    k_sh, k_sev, k_p = jax.random.split(key, 3)
    s_h = jax.random.normal(k_sh, (B, 2), jnp.float32)
    s_ev = jax.random.normal(k_sev, (B, 4), jnp.float32)
    params = init_params(k_p, hidden, a_dim)

    mean, std = actor_forward(s_h, s_ev, params)
    jax.block_until_ready((mean, std))

    mean_ref, std_ref = actor_reference(s_h, s_ev, params)
    assert mean.shape == (B, 1) and std.shape == (a_dim,)
    assert jnp.allclose(mean, mean_ref, atol=1e-5, rtol=1e-5)
    assert jnp.allclose(std, std_ref, atol=1e-6, rtol=1e-6)

    print("KERNEL_OK")
</pallas_src>

<mosaic_0001>
module attributes {stable_mosaic.version = 11 : i64} {
  func.func @actor_kernel(%arg0: i32, %arg1: memref<6x256xf32, #tpu.memory_space<vmem>>, %arg2: memref<32x6xf32, #tpu.memory_space<vmem>>, %arg3: memref<32x32xf32, #tpu.memory_space<vmem>>, %arg4: memref<32x32xf32, #tpu.memory_space<vmem>>, %arg5: memref<32x1xf32, #tpu.memory_space<vmem>>, %arg6: memref<1x256xf32, #tpu.memory_space<vmem>>) attributes {dimension_semantics = [#tpu.dimension_semantics<parallel>], iteration_bounds = array<i64: 1>, scalar_prefetch = 0 : i64, scratch_operands = 0 : i64, tpu.core_type = #tpu.core_type<tc>, window_params = [{transform_indices = @transform_0, window_bounds = array<i64: 6, 256>}, {pipeline_mode = #tpu.pipeline_mode<synchronous>, transform_indices = @transform_1, window_bounds = array<i64: 32, 6>}, {pipeline_mode = #tpu.pipeline_mode<synchronous>, transform_indices = @transform_2, window_bounds = array<i64: 32, 32>}, {pipeline_mode = #tpu.pipeline_mode<synchronous>, transform_indices = @transform_3, window_bounds = array<i64: 32, 32>}, {pipeline_mode = #tpu.pipeline_mode<synchronous>, transform_indices = @transform_4, window_bounds = array<i64: 32, 1>}, {transform_indices = @transform_5, window_bounds = array<i64: 1, 256>}]} {
    %c0 = arith.constant 0 : index
    %c0_0 = arith.constant 0 : index
    %0 = vector.load %arg2[%c0, %c0_0] : memref<32x6xf32, #tpu.memory_space<vmem>>, vector<32x6xf32>
    %c0_1 = arith.constant 0 : index
    %c0_2 = arith.constant 0 : index
    %1 = vector.load %arg1[%c0_1, %c0_2] : memref<6x256xf32, #tpu.memory_space<vmem>>, vector<6x256xf32>
    %cst = arith.constant dense<0.000000e+00> : vector<32x256xf32>
    %2 = tpu.matmul %0, %1, %cst {dimension_numbers = #tpu.dot_dimension_numbers<[1], [0], [0], [1], [0, 0, 1, 1], [], []>} : vector<32x6xf32>, vector<6x256xf32>, vector<32x256xf32> -> vector<32x256xf32>
    %3 = math.tanh %2 : vector<32x256xf32>
    %4 = vector.extract_strided_slice %3 {offsets = [0, 0], sizes = [16, 256], strides = [1, 1]} : vector<32x256xf32> to vector<16x256xf32>
    %5 = vector.extract_strided_slice %3 {offsets = [16, 0], sizes = [16, 256], strides = [1, 1]} : vector<32x256xf32> to vector<16x256xf32>
    %6 = arith.mulf %5, %4 : vector<16x256xf32>
    %7 = tpu.concatenate %4, %6 in 0 : vector<16x256xf32>, vector<16x256xf32> -> vector<32x256xf32>
    %c0_3 = arith.constant 0 : index
    %c0_4 = arith.constant 0 : index
    %8 = vector.load %arg3[%c0_3, %c0_4] : memref<32x32xf32, #tpu.memory_space<vmem>>, vector<32x32xf32>
    %cst_5 = arith.constant dense<0.000000e+00> : vector<32x256xf32>
    %9 = tpu.matmul %8, %7, %cst_5 {dimension_numbers = #tpu.dot_dimension_numbers<[1], [0], [0], [1], [0, 0, 1, 1], [], []>} : vector<32x32xf32>, vector<32x256xf32>, vector<32x256xf32> -> vector<32x256xf32>
    %10 = math.tanh %9 : vector<32x256xf32>
    %c0_6 = arith.constant 0 : index
    %c0_7 = arith.constant 0 : index
    %11 = vector.load %arg4[%c0_6, %c0_7] : memref<32x32xf32, #tpu.memory_space<vmem>>, vector<32x32xf32>
    %cst_8 = arith.constant dense<0.000000e+00> : vector<32x256xf32>
    %12 = tpu.matmul %11, %10, %cst_8 {dimension_numbers = #tpu.dot_dimension_numbers<[1], [0], [0], [1], [0, 0, 1, 1], [], []>} : vector<32x32xf32>, vector<32x256xf32>, vector<32x256xf32> -> vector<32x256xf32>
    %13 = math.tanh %12 : vector<32x256xf32>
    %c0_9 = arith.constant 0 : index
    %c0_10 = arith.constant 0 : index
    %14 = vector.load %arg5[%c0_9, %c0_10] : memref<32x1xf32, #tpu.memory_space<vmem>>, vector<32x1xf32>
    %15 = vector.broadcast %14 : vector<32x1xf32> to vector<32x256xf32>
    %16 = arith.mulf %13, %15 : vector<32x256xf32>
    %cst_11 = arith.constant dense<0.000000e+00> : vector<256xf32>
    %17 = vector.multi_reduction <add>, %16, %cst_11 [0] : vector<32x256xf32> to vector<256xf32>
    %18 = vector.shape_cast %17 : vector<256xf32> to vector<1x256xf32>
    %19 = math.tanh %18 : vector<1x256xf32>
    %c0_12 = arith.constant 0 : index
    %c0_13 = arith.constant 0 : index
    %20 = vector.load %arg6[%c0_12, %c0_13] : memref<1x256xf32, #tpu.memory_space<vmem>>, vector<1x256xf32>
    tpu.vector_store %arg6[%c0_12, %c0_13], %19 {strides = array<i32>} : memref<1x256xf32, #tpu.memory_space<vmem>>, vector<1x256xf32>,
    return
  }
  func.func @transform_0(%arg0: i32) -> (i32, i32) {
    %c0_i32 = arith.constant 0 : i32
    %c0_i32_0 = arith.constant 0 : i32
    return %c0_i32, %arg0 : i32, i32
  }
  func.func @transform_1(%arg0: i32) -> (i32, i32) {
    %c0_i32 = arith.constant 0 : i32
    %c0_i32_0 = arith.constant 0 : i32
    %c0_i32_1 = arith.constant 0 : i32
    return %c0_i32, %c0_i32_0 : i32, i32
  }
  func.func @transform_2(%arg0: i32) -> (i32, i32) {
    %c0_i32 = arith.constant 0 : i32
    %c0_i32_0 = arith.constant 0 : i32
    %c0_i32_1 = arith.constant 0 : i32
    return %c0_i32, %c0_i32_0 : i32, i32
  }
  func.func @transform_3(%arg0: i32) -> (i32, i32) {
    %c0_i32 = arith.constant 0 : i32
    %c0_i32_0 = arith.constant 0 : i32
    %c0_i32_1 = arith.constant 0 : i32
    return %c0_i32, %c0_i32_0 : i32, i32
  }
  func.func @transform_4(%arg0: i32) -> (i32, i32) {
    %c0_i32 = arith.constant 0 : i32
    %c0_i32_0 = arith.constant 0 : i32
    %c0_i32_1 = arith.constant 0 : i32
    return %c0_i32, %c0_i32_0 : i32, i32
  }
  func.func @transform_5(%arg0: i32) -> (i32, i32) {
    %c0_i32 = arith.constant 0 : i32
    %c0_i32_0 = arith.constant 0 : i32
    return %c0_i32, %arg0 : i32, i32
  }
}

</mosaic_0001>

<bundles_post_ra>
// kernel: tpu_custom_call.1
= control target key start
LH: loop header
LB: loop body
LE: loop exit
PB: predicated region body
PF: predicated region fallthrough
CT: control target
= control target key end

     0   :  { %10 = vsyncpa [#allocation3], 0  ;;  %s705_s0 = inlined_call_operand.hbm [shape: f32[6,256], index: 0, kind: input, shape index: {}]   ;;  %s706_s1 = inlined_call_operand.vmem [shape: f32[32,6], index: 1, kind: input, shape index: {}]   ;;  %s707_s2 = inlined_call_operand.vmem [shape: f32[32,32], index: 2, kind: input, shape index: {}]   ;;  %s708_s3 = inlined_call_operand.vmem [shape: f32[32,32], index: 3, kind: input, shape index: {}]   ;;  %s709_s4 = inlined_call_operand.vmem [shape: f32[32,1], index: 4, kind: input, shape index: {}]   ;;  %s710_s5 = inlined_call_operand.hbm [shape: f32[1,256], index: 5, kind: output, shape index: {}]  }
   0x1   :  { %11 = vsyncpa [#allocation4], 0  ;;  %s596_s18 = smov [#allocation2]  }
   0x2   :  { %s18_s19 = sshll.u32 %s596_s18, 4  ;;  %s19_s19 = int_to_ptr.vmem [resolvable:$true] %s18_s19 }
   0x3   :  { %s560_s20 = scalar_lea.vmem %s19_s19, 256  ;;  %p565_p1 = scmp.lt.s32.totalorder %s19_s19, %s19_s19 }
   0x4   :  { %p561_p0 = scmp.ne.s32.totalorder %s19_s19, %s560_s20  ;;  %p566_p2 = scmp.lt.s32.totalorder %s560_s20, %s560_s20 }
   0x6   :  { %p567_p3 = por %p566_p2, %p565_p1 }
   0x8   :  { %p568_p4 = pnand %p567_p3, %p561_p0 }
   0xa   :  { %571 = shalt.err (!%p568_p4)
}
   0xb   :  { %21 = dma.hbm_to_vmem [thread:$0]  %s705_s0, 256, %s19_s19, [#allocation3]  }
   0xc   :  { %592 = dma.done.wait [#allocation3], 256  }
   0xd   :  { %593 = vsyncadd [#allocation3], 4294967040  ;;  %v597_v0 = vmov 0.0   ;;  %vm52_vm0 = vcmask 1045504   ;;  %v38_v1 = vld [vmem:[#allocation2 + $0x8] sm:$0x3f] }
   0xe   :  { %123 = vmatprep.mubr.f32.mxu0 %v597_v0  ;;  %135 = vmatprep.mubr.f32.mxu1 %v597_v0  ;;  %v37_v2 = vld [vmem:[#allocation2] sm:$0x3f]  ;;  %vm39_vm1 = vcmask 48128   ;;  %v35_v4 = vld [vmem:[%s706_s1 + $0x10] sm:$0xff]  ;;  %v34_v5 = vld [vmem:[%s706_s1 + $0x8] sm:$0xff]  ;;  %vm164_vm2 = vcmask 261120  }
   0xf   :  { %v33_v3 = vld [vmem:[%s706_s1] sm:$0xff]  ;;  %477 = vmatprep.subr.msk.mxu0 %vm52_vm0, %v38_v1  ;;  %491 = vmatprep.subr.msk.mxu1 %vm52_vm0, %v38_v1  ;;  %v36_v6 = vld [vmem:[%s706_s1 + $0x18] sm:$0xff]  ;;  %v161_v28 = vld [vmem:[%s707_s2 + $0x8] sm:$0xff]  ;;  %v598_v33 = vmov 0  }
  0x10   :  { %478 = vmatpush1.msk.msra.mxu0 %vm52_vm0, %v37_v2  ;;  %492 = vmatpush1.msk.msra.mxu1 %vm52_vm0, %v37_v2  ;;  %v160_v27 = vld [vmem:[%s707_s2] sm:$0xff]  ;;  %v162_v29 = vld [vmem:[%s707_s2 + $0x10] sm:$0xff]  ;;  %v163_v30 = vld [vmem:[%s707_s2 + $0x18] sm:$0xff] }
  0x11   :  { %479 = vmatmul.mubr.msk.f32.vlgmr.msra.gmra.mxu0 %vm39_vm1, %v33_v3  ;;  %481 = vmatmul.mubr.msk.f32.vlgmr.msra.gmra.mxu1 %vm39_vm1, %v35_v4  ;;  %v387_v31 = vld [vmem:[%s709_s4] sm:$0xff]  ;;  %v389_v32 = vld [vmem:[%s709_s4 + $0x10] sm:$0xff]  ;;  %v388_v34 = vld [vmem:[%s709_s4 + $0x8] sm:$0xff] }
  0x12   :  { %129 = vmatprep.mubr.f32.mxu0 %v597_v0  ;;  %141 = vmatprep.mubr.f32.mxu1 %v597_v0  ;;  %v390_v35 = vld [vmem:[%s709_s4 + $0x18] sm:$0xff]  ;;  %v274_v51 = vld [vmem:[%s708_s3] sm:$0xff]  ;;  %v275_v53 = vld [vmem:[%s708_s3 + $0x8] sm:$0xff] }
  0x13   :  { %498 = vset.pattern.permute.xlu0 %v598_v33  ;;  %499 = vset.pattern.permute.xlu1 %v598_v33  ;;  %v276_v54 = vld [vmem:[%s708_s3 + $0x10] sm:$0xff]  ;;  %v277_v55 = vld [vmem:[%s708_s3 + $0x18] sm:$0xff]  ;;  %s600_s3 = smov [#allocation5]  }
  0x14   :  { %393 = vperm.xlu0 %498, %v387_v31   ;;  %403 = vperm.xlu1 %499, %v389_v32   ;;  %s468_s26 = sshll.u32 %s600_s3, 4  ;;  %s469_s26 = int_to_ptr.vmem [resolvable:$true] %s468_s26 }
  0x15   :  { %480 = vmatmul.mubr.msk.f32.gmra.mxu0 %vm39_vm1, %v34_v5  ;;  %482 = vmatmul.mubr.msk.f32.gmra.mxu1 %vm39_vm1, %v36_v6  ;;  %s572_s0 = scalar_lea.vmem %s469_s26, 32  ;;  %p577_p6 = scmp.lt.s32.totalorder %s469_s26, %s469_s26 }
  0x16   :  { %241 = vmatprep.mubr.f32.mxu1 %v597_v0  ;;  %354 = vmatprep.mubr.f32.mxu0 %v597_v0  ;;  %p573_p5 = scmp.ne.s32.totalorder %s469_s26, %s572_s0  ;;  %p578_p7 = scmp.lt.s32.totalorder %s572_s0, %s572_s0 }
  0x18   :  { %398 = vperm.xlu0 %498, %v388_v34   ;;  %408 = vperm.xlu1 %499, %v390_v35   ;;  %p579_p8 = por %p578_p7, %p577_p6 }
  0x1a   :  { %p580_p9 = pnand %p579_p8, %p573_p5 }
  0x8f   :  { %v394_v63 = vpop.permute.xlu0 %393  ;;  %v404_v5 = vpop.permute.xlu1 %403 }
  0x93   :  { %v399_v2 = vpop.permute.xlu0 %398 }
  0xd1   :  { %v125_v7 = vpop.f32.mrf.mxu0  ;;  %v137_v8 = vpop.f32.mrf.mxu1 }
  0xd2   :  { %500 = vtanh.f32 %v125_v7 }
  0xd3   :  { %v127_v9 = vpop.f32.mrf.mxu0  ;;  %v139_v10 = vpop.f32.mrf.mxu1 }
  0xd4   :  { %502 = vtanh.f32 %v127_v9 }
  0xd5   :  { %504 = vtanh.f32 %v139_v10  ;;  %v131_v11 = vpop.f32.mrf.mxu0  ;;  %v143_v12 = vpop.f32.mrf.mxu1 }
  0xd6   :  { %506 = vtanh.f32 %v131_v11 }
  0xd7   :  { %508 = vtanh.f32 %v143_v12  ;;  %v133_v13 = vpop.f32.mrf.mxu0  ;;  %v145_v14 = vpop.f32.mrf.mxu1 }
  0xd8   :  { %510 = vtanh.f32 %v133_v13 }
  0xd9   :  { %512 = vtanh.f32 %v145_v14 }
  0xda   :  { %514 = vtanh.f32 %v137_v8 }
  0xdf   :  { %v501_v15 = vpop.eup %500 }
  0xe1   :  { %v503_v16 = vpop.eup %502 }
  0xe2   :  { %v505_v17 = vpop.eup %504 }
  0xe3   :  { %v507_v18 = vpop.eup %506  ;;  %v157_v25 = vmul.f32 %v505_v17, %v503_v16  ;;  %v409_v17 = vpop.permute.xlu1 %408 }
  0xe4   :  { %v509_v19 = vpop.eup %508 }
  0xe5   :  { %v511_v20 = vpop.eup %510  ;;  %v158_v24 = vmul.f32 %v509_v19, %v507_v18 }
  0xe6   :  { %v513_v21 = vpop.eup %512 }
  0xe7   :  { %v515_v22 = vpop.eup %514  ;;  %v159_v23 = vmul.f32 %v513_v21, %v511_v20 }
  0xe8   :  { %v156_v26 = vmul.f32 %v515_v22, %v501_v15 }
  0xe9   :  { %201 = vmatprep.subr.mxu1 %v159_v23 }
  0xea   :  { %202 = vmatpush1.msra.mxu1 %v158_v24 }
  0xeb   :  { %203 = vmatprep.subr.mxu1 %v157_v25 }
  0xec   :  { %204 = vmatpush1.msra.mxu1 %v156_v26 }
  0xed   :  { %205 = vmatprep.subr.mxu1 %v511_v20 }
  0xee   :  { %206 = vmatpush1.msra.mxu1 %v507_v18 }
  0xef   :  { %207 = vmatprep.subr.mxu1 %v503_v16 }
  0xf0   :  { %208 = vmatpush1.msra.mxu1 %v501_v15 }
  0xf1   :  { %483 = vmatmul.mubr.msk.f32.vlgmr.msra.gmra.mxu1 %vm164_vm2, %v160_v27 }
  0xf2   :  { %247 = vmatprep.mubr.f32.mxu1 %v597_v0 }
  0xf5   :  { %484 = vmatmul.mubr.msk.f32.gmra.mxu1 %vm164_vm2, %v161_v28 }
  0xf6   :  { %253 = vmatprep.mubr.f32.mxu1 %v597_v0 }
  0xf9   :  { %485 = vmatmul.mubr.msk.f32.gmra.mxu1 %vm164_vm2, %v162_v29 }
  0xfa   :  { %259 = vmatprep.mubr.f32.mxu1 %v597_v0 }
  0xfd   :  { %486 = vmatmul.mubr.msk.f32.gmra.mxu1 %vm164_vm2, %v163_v30 }
 0x1b1   :  { %v243_v36 = vpop.f32.mrf.mxu1 }
 0x1b3   :  { %v245_v37 = vpop.f32.mrf.mxu1 }
 0x1b5   :  { %v249_v38 = vpop.f32.mrf.mxu1 }
 0x1b7   :  { %v251_v39 = vpop.f32.mrf.mxu1 }
 0x1b9   :  { %v255_v40 = vpop.f32.mrf.mxu1 }
 0x1bb   :  { %v257_v41 = vpop.f32.mrf.mxu1 }
 0x1bd   :  { %v261_v42 = vpop.f32.mrf.mxu1 }
 0x1bf   :  { %v263_v43 = vpop.f32.mrf.mxu1 }
 0x1c0   :  { %516 = vtanh.f32 %v263_v43 }
 0x1c1   :  { %518 = vtanh.f32 %v261_v42 }
 0x1c2   :  { %520 = vtanh.f32 %v257_v41 }
 0x1c3   :  { %522 = vtanh.f32 %v255_v40  ;;  %v445_v40 = vlaneseq }
 0x1c4   :  { %524 = vtanh.f32 %v251_v39 }
 0x1c5   :  { %526 = vtanh.f32 %v249_v38  ;;  %v599_v38 = vmov 1966171168   ;;  %v446_v42 = vshrl.u32 %v445_v40, 7  ;;  %vm459_vm3 = vcmp.lt.s32.totalorder %v445_v40, 256 }
 0x1c6   :  { %528 = vtanh.f32 %v245_v37  ;;  %v443_v39 = vunpack.c.l.s4 %v599_v38 }
 0x1c7   :  { %530 = vtanh.f32 %v243_v36 }
 0x1c8   :  { %v444_v41 = vunpack.c.0.s8 %v443_v39 }
 0x1cd   :  { %v517_v44 = vpop.eup %516 }
 0x1ce   :  { %v519_v45 = vpop.eup %518  ;;  %314 = vmatprep.subr.mxu0 %v517_v44  ;;  %v447_v44 = vsub.s32 %v444_v41, %v446_v42 }
 0x1cf   :  { %v521_v46 = vpop.eup %520  ;;  %315 = vmatpush1.msra.mxu0 %v519_v45 }
 0x1d0   :  { %v523_v47 = vpop.eup %522  ;;  %316 = vmatprep.subr.mxu0 %v521_v46 }
 0x1d1   :  { %v525_v48 = vpop.eup %524  ;;  %317 = vmatpush1.msra.mxu0 %v523_v47 }
 0x1d2   :  { %v527_v49 = vpop.eup %526  ;;  %318 = vmatprep.subr.mxu0 %v525_v48 }
 0x1d3   :  { %v529_v50 = vpop.eup %528  ;;  %319 = vmatpush1.msra.mxu0 %v527_v49 }
 0x1d4   :  { %v531_v52 = vpop.eup %530  ;;  %320 = vmatprep.subr.mxu0 %v529_v50 }
 0x1d5   :  { %321 = vmatpush1.msra.mxu0 %v531_v52 }
 0x1d6   :  { %487 = vmatmul.mubr.msk.f32.vlgmr.msra.gmra.mxu0 %vm164_vm2, %v274_v51 }
 0x1d7   :  { %360 = vmatprep.mubr.f32.mxu0 %v597_v0 }
 0x1da   :  { %488 = vmatmul.mubr.msk.f32.gmra.mxu0 %vm164_vm2, %v275_v53 }
 0x1db   :  { %366 = vmatprep.mubr.f32.mxu0 %v597_v0 }
 0x1de   :  { %489 = vmatmul.mubr.msk.f32.gmra.mxu0 %vm164_vm2, %v276_v54 }
 0x1df   :  { %372 = vmatprep.mubr.f32.mxu0 %v597_v0 }
 0x1e2   :  { %490 = vmatmul.mubr.msk.f32.gmra.mxu0 %vm164_vm2, %v277_v55 }
 0x296   :  { %v356_v56 = vpop.f32.mrf.mxu0 }
 0x298   :  { %v358_v57 = vpop.f32.mrf.mxu0 }
 0x29a   :  { %v362_v58 = vpop.f32.mrf.mxu0 }
 0x29b   :  { %532 = vtanh.f32 %v362_v58 }
 0x29c   :  { %534 = vtanh.f32 %v356_v56  ;;  %v364_v59 = vpop.f32.mrf.mxu0 }
 0x29d   :  { %536 = vtanh.f32 %v364_v59 }
 0x29e   :  { %538 = vtanh.f32 %v358_v57  ;;  %v368_v60 = vpop.f32.mrf.mxu0 }
 0x29f   :  { %540 = vtanh.f32 %v368_v60 }
 0x2a0   :  { %v370_v61 = vpop.f32.mrf.mxu0 }
 0x2a1   :  { %542 = vtanh.f32 %v370_v61 }
 0x2a2   :  { %v374_v62 = vpop.f32.mrf.mxu0 }
 0x2a3   :  { %544 = vtanh.f32 %v374_v62 }
 0x2a4   :  { %v376_v0 = vpop.f32.mrf.mxu0 }
 0x2a5   :  { %546 = vtanh.f32 %v376_v0 }
 0x2a8   :  { %v533_v1 = vpop.eup %532 }
 0x2a9   :  { %v535_v3 = vpop.eup %534  ;;  %v413_v7 = vmul.f32 %v533_v1, %v399_v2 }
 0x2aa   :  { %v537_v4 = vpop.eup %536  ;;  %v411_v9 = vmul.f32 %v535_v3, %v394_v63 }
 0x2ab   :  { %v539_v6 = vpop.eup %538  ;;  %v414_v10 = vmul.f32 %v537_v4, %v399_v2 }
 0x2ac   :  { %v541_v8 = vpop.eup %540  ;;  %v412_v13 = vmul.f32 %v539_v6, %v394_v63  ;;  %v419_v14 = vadd.f32 %v413_v7, %v411_v9 }
 0x2ad   :  { %v415_v11 = vmul.f32 %v541_v8, %v404_v5 }
 0x2ae   :  { %v543_v12 = vpop.eup %542  ;;  %v428_v18 = vadd.f32 %v414_v10, %v412_v13 }
 0x2af   :  { %v416_v15 = vmul.f32 %v543_v12, %v404_v5  ;;  %v420_v19 = vadd.f32 %v419_v14, %v415_v11 }
 0x2b0   :  { %v545_v16 = vpop.eup %544 }
 0x2b1   :  { %v417_v20 = vmul.f32 %v545_v16, %v409_v17  ;;  %v429_v22 = vadd.f32 %v428_v18, %v416_v15 }
 0x2b2   :  { %v547_v21 = vpop.eup %546 }
 0x2b3   :  { %v418_v23 = vmul.f32 %v547_v21, %v409_v17  ;;  %v421_v24 = vadd.f32 %v420_v19, %v417_v20 }
 0x2b5   :  { %v422_v25 = vrot.slane %v421_v24, 4  ;;  %v430_v26 = vadd.f32 %v429_v22, %v418_v23 }
 0x2b7   :  { %v423_v27 = vadd.f32 %v422_v25, %v421_v24  ;;  %v431_v28 = vrot.slane %v430_v26, 4 }
 0x2b9   :  { %v424_v29 = vrot.slane %v423_v27, 2  ;;  %v432_v30 = vadd.f32 %v431_v28, %v430_v26 }
 0x2bb   :  { %v425_v31 = vadd.f32 %v424_v29, %v423_v27  ;;  %v433_v32 = vrot.slane %v432_v30, 2 }
 0x2bd   :  { %v426_v33 = vrot.slane %v425_v31, 1  ;;  %v434_v34 = vadd.f32 %v433_v32, %v432_v30 }
 0x2bf   :  { %v427_v35 = vadd.f32 %v426_v33, %v425_v31  ;;  %v435_v36 = vrot.slane %v434_v34, 1 }
 0x2c1   :  { %v436_v37 = vadd.f32 %v435_v36, %v434_v34  ;;  %548 = vtanh.f32 %v427_v35 }
 0x2c3   :  { %550 = vtanh.f32 %v436_v37 }
 0x2ce   :  { %v549_v43 = vpop.eup %548 }
 0x2d0   :  { %v551_v45 = vpop.eup %550 }
 0x2d1   :  { %v441_v46 = vcombine.low %v549_v43, %v551_v45 }
 0x2d3   :  { %v448_v47 = vrot.slane %v441_v46, %v447_v44 }
 0x2d5   :  { %v455_v48 = vrot.slane %v448_v47, %v447_v44 }
 0x2d7   :  { %461 = vst.msk [vmem:[#allocation5] sm:$0x3] %vm459_vm3, %v455_v48 }
 0x2d8   :  { %583 = shalt.err (!%p580_p9)
}
 0x2d9   :  { %471 = dma.vmem_to_hbm [thread:$0]  %s469_s26, 32, %s710_s5, [#allocation4]  }
 0x2da   :  { %594 = dma.done.wait [#allocation4], 32  }
 0x2db   :  { %595 = vsyncadd [#allocation4], 4294967264 }
 0x2dc   :  { %475 = vsyncpa [#allocation3], 1 }
 0x2dd   :  { %476 = vsyncpa [#allocation4], 1 }

</bundles_post_ra>
